<compile_context>
chip_gen: v7x
topology: tpu7x:2x2x1
jax: 0.10.0
libtpu: 0.0.40
codegen_flags: <defaults>
</compile_context>

<pallas_src>
import functools

import jax
import jax.numpy as jnp
from jax.experimental import pallas as pl
from jax.experimental.pallas import tpu as pltpu


def _round_up(x, m):
    return ((x + m - 1) // m) * m


def _sine_activation_kernel(tau_ref, w_ref, b_ref, out_ref, *, k1, period):
    tau = tau_ref[...]                                   # [TILE_M, R*in_features]

    # Single fused matmul over the block-diagonal weights, f32 accumulation.
    y = jnp.dot(tau, w_ref[...], preferred_element_type=jnp.float32)
    y = y + b_ref[...]                                   # [1, R*out] broadcast add

    # Hoisted column mask: within each folded group of `period` columns,
    # the first k1 columns get sin(), the rest stay linear.
    col = jax.lax.broadcasted_iota(jnp.int32, (1, y.shape[-1]), 1)
    out = jnp.where((col % period) < k1, jnp.sin(y), y)

    out_ref[...] = out.astype(out_ref.dtype)             # one full-block store


def fuse_sine_params(w, b, w0, b0, *, fold=1):
    """Precompute (once, at init) the fused / folded weights and biases."""
    in_features, k1 = w.shape
    nmodes = w0.shape[1]
    out_features = k1 + nmodes

    w_cat = jnp.concatenate([w, w0], axis=1)             # [in, out]
    b_cat = jnp.concatenate([b, b0], axis=0)             # [out]

    if fold > 1:
        # Block-diagonal: R copies of W_cat on the diagonal -> [R*in, R*out].
        w_cat = jnp.kron(jnp.eye(fold, dtype=w_cat.dtype), w_cat)
        b_cat = jnp.tile(b_cat, (fold,))

    return {
        "w": w_cat,
        "b": b_cat.reshape(1, -1),
        "k1": k1,
        "out_features": out_features,
        "in_features": in_features,
        "fold": fold,
    }


def sine_activation(tau, params, *, tile_m=4096):
    """tau: [M, in_features]; returns [M, out_features] = cat([sin branch, linear branch])."""
    M, in_features = tau.shape
    fold = params["fold"]
    out_features = params["out_features"]
    assert in_features == params["in_features"]
    assert M % fold == 0, "fold factor must divide the number of rows"

    m_rows = M // fold
    in_cols = fold * in_features
    out_cols = fold * out_features

    # Free row-major reshape: fold R rows into the lane axis.
    tau_f = tau.reshape(m_rows, in_cols)

    # Row tile: multiple of 8 (sublane); cap so the grid has >=2 parallel tiles
    # whenever possible (lets both v7x TensorCores stream; harmless on v5e/v6e).
    cap = _round_up(pl.cdiv(m_rows, 2), 8)
    tile_m = max(8, min(_round_up(tile_m, 8), cap))
    grid = (pl.cdiv(m_rows, tile_m),)                    # ragged last tile OK

    out = pl.pallas_call(
        functools.partial(_sine_activation_kernel,
                          k1=params["k1"], period=out_features),
        out_shape=jax.ShapeDtypeStruct((m_rows, out_cols), tau.dtype),
        grid_spec=pltpu.PrefetchScalarGridSpec(
            num_scalar_prefetch=0,
            grid=grid,
            in_specs=[
                # tau tiles stream over the grid; weights/biases stay resident.
                pl.BlockSpec((tile_m, in_cols), lambda i: (i, 0)),
                pl.BlockSpec((in_cols, out_cols), lambda i: (0, 0)),
                pl.BlockSpec((1, out_cols), lambda i: (0, 0)),
            ],
            out_specs=pl.BlockSpec((tile_m, out_cols), lambda i: (i, 0)),
        ),
        compiler_params=pltpu.CompilerParams(
            dimension_semantics=("parallel",),
            vmem_limit_bytes=32 * 1024 * 1024),
    )(tau_f, params["w"], params["b"])

    # [M/R, R*out] is bit-identical row-major to [M, out]: free view reshape.
    return out.reshape(M, out_features)


def _pick_fold(M):
    # Largest of {4, 2, 1} that divides M (4 gives 384 = 3*128 lane-dense output).
    for r in (4, 2, 1):
        if M % r == 0:
            return r
    return 1


def _xavier_uniform(key, shape, dtype=jnp.float32):
    fan_in, fan_out = shape
    limit = (6.0 / (fan_in + fan_out)) ** 0.5
    return jax.random.uniform(key, shape, dtype, minval=-limit, maxval=limit)


if __name__ == "__main__":
    # Module config consistent with SineActivation(in_features, nmodes, out_features).
    in_features = 8
    nmodes = 32
    out_features = 96
    M = 16  # number of "tau" rows (e.g. batch * seq flattened)

    key = jax.random.PRNGKey(0)
    k_tau, k_w0, k_b0, k_w, k_b = jax.random.split(key, 5)

    tau = jax.random.normal(k_tau, (M, in_features), jnp.float32)
    w0 = _xavier_uniform(k_w0, (in_features, nmodes))
    b0 = jax.random.normal(k_b0, (nmodes,), jnp.float32)
    w = _xavier_uniform(k_w, (in_features, out_features - nmodes))
    b = jax.random.normal(k_b, (out_features - nmodes,), jnp.float32)

    def reference(t):
        v1 = jnp.sin(t @ w + b)
        v2 = t @ w0 + b0
        return jnp.concatenate([v1, v2], axis=-1)

    # --- main check: M divisible by 4 -> fully lane-dense (384) path ---------
    params4 = fuse_sine_params(w, b, w0, b0, fold=_pick_fold(M))
    out = jax.block_until_ready(sine_activation(tau, params4))
    assert out.shape == (M, out_features)
    assert jnp.allclose(out, reference(tau), atol=1e-5, rtol=1e-5)

    # --- ragged-tile check: M2 rows don't fill the last row tile -------------
    M2 = 10
    tau2 = jax.random.normal(jax.random.PRNGKey(1), (M2, in_features), jnp.float32)
    params2 = fuse_sine_params(w, b, w0, b0, fold=_pick_fold(M2))
    out2 = jax.block_until_ready(sine_activation(tau2, params2))
    assert out2.shape == (M2, out_features)
    assert jnp.allclose(out2, reference(tau2), atol=1e-5, rtol=1e-5)

    print("KERNEL_OK")
</pallas_src>

<mosaic_0001>
module attributes {stable_mosaic.version = 11 : i64} {
  func.func @_sine_activation_kernel(%arg0: i32, %arg1: memref<8x32xf32, #tpu.memory_space<vmem>>, %arg2: memref<32x384xf32, #tpu.memory_space<vmem>>, %arg3: memref<1x384xf32, #tpu.memory_space<vmem>>, %arg4: memref<8x384xf32, #tpu.memory_space<vmem>>) attributes {dimension_semantics = [#tpu.dimension_semantics<parallel>], iteration_bounds = array<i64: 1>, scalar_prefetch = 0 : i64, scratch_operands = 0 : i64, tpu.core_type = #tpu.core_type<tc>, window_params = [{transform_indices = @transform_0, window_bounds = array<i64: 8, 32>}, {pipeline_mode = #tpu.pipeline_mode<synchronous>, transform_indices = @transform_1, window_bounds = array<i64: 32, 384>}, {pipeline_mode = #tpu.pipeline_mode<synchronous>, transform_indices = @transform_2, window_bounds = array<i64: 1, 384>}, {transform_indices = @transform_3, window_bounds = array<i64: 8, 384>}]} {
    %c0 = arith.constant 0 : index
    %c0_0 = arith.constant 0 : index
    %0 = vector.load %arg1[%c0, %c0_0] : memref<8x32xf32, #tpu.memory_space<vmem>>, vector<8x32xf32>
    %c0_1 = arith.constant 0 : index
    %c0_2 = arith.constant 0 : index
    %1 = vector.load %arg2[%c0_1, %c0_2] : memref<32x384xf32, #tpu.memory_space<vmem>>, vector<32x384xf32>
    %cst = arith.constant dense<0.000000e+00> : vector<8x384xf32>
    %2 = tpu.matmul %0, %1, %cst {dimension_numbers = #tpu.dot_dimension_numbers<[1], [0], [0], [1], [0, 0, 1, 1], [], []>} : vector<8x32xf32>, vector<32x384xf32>, vector<8x384xf32> -> vector<8x384xf32>
    %c0_3 = arith.constant 0 : index
    %c0_4 = arith.constant 0 : index
    %3 = vector.load %arg3[%c0_3, %c0_4] : memref<1x384xf32, #tpu.memory_space<vmem>>, vector<1x384xf32>
    %4 = vector.broadcast %3 : vector<1x384xf32> to vector<8x384xf32>
    %5 = arith.addf %2, %4 : vector<8x384xf32>
    %6 = tpu.iota {dimensions = array<i32: 1>} : vector<1x384xi32>
    %c96_i32 = arith.constant 96 : i32
    %c0_i32 = arith.constant 0 : i32
    %7 = arith.cmpi eq, %c96_i32, %c0_i32 : i32
    %c1_i32 = arith.constant 1 : i32
    %8 = arith.select %7, %c1_i32, %c96_i32 : i32
    %9 = vector.broadcast %8 : i32 to vector<1x384xi32>
    %10 = arith.remsi %6, %9 : vector<1x384xi32>
    %c0_i32_5 = arith.constant 0 : i32
    %11 = vector.broadcast %c0_i32_5 : i32 to vector<1x384xi32>
    %12 = arith.cmpi ne, %10, %11 : vector<1x384xi32>
    %c0_i32_6 = arith.constant 0 : i32
    %13 = vector.broadcast %c0_i32_6 : i32 to vector<1x384xi32>
    %14 = arith.cmpi slt, %10, %13 : vector<1x384xi32>
    %c0_i32_7 = arith.constant 0 : i32
    %15 = arith.cmpi slt, %8, %c0_i32_7 : i32
    %16 = vector.broadcast %15 : i1 to vector<1x384xi1>
    %17 = vector.broadcast %16 : vector<1x384xi1> to vector<1x384xi1>
    %18 = arith.xori %14, %17 : vector<1x384xi1>
    %19 = arith.andi %18, %12 : vector<1x384xi1>
    %20 = vector.broadcast %8 : i32 to vector<1x384xi32>
    %21 = arith.addi %10, %20 : vector<1x384xi32>
    %22 = arith.select %19, %21, %10 : vector<1x384xi1>, vector<1x384xi32>
    %c64_i32 = arith.constant 64 : i32
    %23 = vector.broadcast %c64_i32 : i32 to vector<1x384xi32>
    %24 = arith.cmpi slt, %22, %23 : vector<1x384xi32>
    %25 = math.sin %5 : vector<8x384xf32>
    %26 = vector.shape_cast %24 : vector<1x384xi1> to vector<1x384xi1>
    %27 = vector.broadcast %26 : vector<1x384xi1> to vector<8x384xi1>
    %28 = arith.select %27, %25, %5 : vector<8x384xi1>, vector<8x384xf32>
    %c0_8 = arith.constant 0 : index
    %c0_9 = arith.constant 0 : index
    %29 = vector.load %arg4[%c0_8, %c0_9] : memref<8x384xf32, #tpu.memory_space<vmem>>, vector<8x384xf32>
    tpu.vector_store %arg4[%c0_8, %c0_9], %28 {strides = array<i32>} : memref<8x384xf32, #tpu.memory_space<vmem>>, vector<8x384xf32>,
    return
  }
  func.func @transform_0(%arg0: i32) -> (i32, i32) {
    %c0_i32 = arith.constant 0 : i32
    %c0_i32_0 = arith.constant 0 : i32
    return %arg0, %c0_i32 : i32, i32
  }
  func.func @transform_1(%arg0: i32) -> (i32, i32) {
    %c0_i32 = arith.constant 0 : i32
    %c0_i32_0 = arith.constant 0 : i32
    %c0_i32_1 = arith.constant 0 : i32
    return %c0_i32, %c0_i32_0 : i32, i32
  }
  func.func @transform_2(%arg0: i32) -> (i32, i32) {
    %c0_i32 = arith.constant 0 : i32
    %c0_i32_0 = arith.constant 0 : i32
    %c0_i32_1 = arith.constant 0 : i32
    return %c0_i32, %c0_i32_0 : i32, i32
  }
  func.func @transform_3(%arg0: i32) -> (i32, i32) {
    %c0_i32 = arith.constant 0 : i32
    %c0_i32_0 = arith.constant 0 : i32
    return %arg0, %c0_i32 : i32, i32
  }
}

</mosaic_0001>

<bundles_post_ra>
// kernel: tpu_custom_call.1
= control target key start
LH: loop header
LB: loop body
LE: loop exit
PB: predicated region body
PF: predicated region fallthrough
CT: control target
= control target key end

     0   :  { %8 = vsyncpa [#allocation3], 0  ;;  %s1103_s0 = inlined_call_operand.hbm [shape: f32[4,32], index: 0, kind: input, shape index: {}]   ;;  %s1104_s1 = inlined_call_operand.hbm [shape: f32[32,384], index: 1, kind: input, shape index: {}]   ;;  %s1105_s2 = inlined_call_operand.vmem [shape: f32[1,384], index: 2, kind: input, shape index: {}]   ;;  %s1106_s3 = inlined_call_operand.hbm [shape: f32[4,384], index: 3, kind: output, shape index: {}]  }
   0x1   :  { %9 = vsyncpa [#allocation6], 0 }
   0x2   :  { %10 = vsyncpa [#allocation4], 0 }
   0x3   :  { %15 = vsyncadd [#allocation3], 64  ;;  %s789_s12 = smov [#allocation2]   ;;  %s717_s16 = scalar_lea.hbm %s1103_s0, 64 }
   0x4   :  { %s16_s13 = sshll.u32 %s789_s12, 4  ;;  %p718_p0 = scmp.ne.s32.totalorder %s1103_s0, %s717_s16  ;;  %s17_s13 = int_to_ptr.vmem [resolvable:$true] %s16_s13 }
   0x5   :  { %p721_p1 = scmp.lt.u32.totalorder %s717_s16, %s1103_s0 }
   0x7   :  { %p723_p2 = pnand %p721_p1, %p718_p0 }
   0x9   :  { %726 = shalt.err (!%p723_p2)
}
   0xa   :  { %s727_s21 = scalar_lea.vmem %s17_s13, 64  ;;  %s731_s22 = scalar_lea.vmem %s17_s13, 128 }
   0xb   :  { %p728_p3 = scmp.ne.s32.totalorder %s17_s13, %s727_s21  ;;  %p732_p4 = scmp.lt.s32.totalorder %s17_s13, %s17_s13 }
   0xc   :  { %p733_p5 = scmp.lt.s32.totalorder %s731_s22, %s727_s21 }
   0xe   :  { %p734_p6 = por %p733_p5, %p732_p4 }
  0x10   :  { %p735_p7 = pnand %p734_p6, %p728_p3 }
  0x12   :  { %738 = shalt.err (!%p735_p7)
}
  0x13   :  { %s790_s23 = smov 64   ;;  %s791_s24 = smov 4  }
  0x14   :  { %22 = dma.hbm_to_vmem [thread:$0]  %s1103_s0, 64, %s17_s13, [#allocation3], %s790_s23, %s790_s23, %s791_s24  }
  0x15   :  { %s792_s27 = smov [#allocation5]   ;;  %s739_s4 = scalar_lea.hbm %s1104_s1, 1536 }
  0x16   :  { %s28_s28 = sshll.u32 %s792_s27, 4  ;;  %p740_p8 = scmp.ne.s32.totalorder %s1104_s1, %s739_s4  ;;  %s29_s28 = int_to_ptr.vmem [resolvable:$true] %s28_s28 }
  0x17   :  { %p743_p9 = scmp.lt.u32.totalorder %s739_s4, %s1104_s1 }
  0x19   :  { %p745_p10 = pnand %p743_p9, %p740_p8 }
  0x1b   :  { %748 = shalt.err (!%p745_p10)
}
  0x1c   :  { %s749_s9 = scalar_lea.vmem %s29_s28, 1536  ;;  %p754_p12 = scmp.lt.s32.totalorder %s29_s28, %s29_s28 }
  0x1d   :  { %p750_p11 = scmp.ne.s32.totalorder %s29_s28, %s749_s9  ;;  %p755_p13 = scmp.lt.s32.totalorder %s749_s9, %s749_s9 }
  0x1f   :  { %p756_p0 = por %p755_p13, %p754_p12 }
  0x21   :  { %p757_p1 = pnand %p756_p0, %p750_p11 }
  0x23   :  { %760 = shalt.err (!%p757_p1)
}
  0x24   :  { %s793_s0 = smov 384   ;;  %s794_s10 = smov 24  }
  0x25   :  { %34 = dma.hbm_to_vmem [thread:$0]  %s1104_s1, 1536, %s29_s28, [#allocation6], %s793_s0, %s793_s0, %s794_s10  }
  0x26   :  { %783 = dma.done.wait [#allocation3], 128  }
  0x27   :  { %784 = vsyncadd [#allocation3], 4294967168 }
  0x28   :  { %785 = dma.done.wait [#allocation6], 1536  }
  0x29   :  { %786 = vsyncadd [#allocation6], 4294965760  ;;  %v795_v0 = vmov 0.0|0.0   ;;  %vm796_vm0 = vmmov 0   ;;  %v797_v1 = vmov 0.0   ;;  %v45_v2 = vld [vmem:[#allocation5 + $0x8] sm:$0xff]  ;;  %v58_v21 = vlaneseq }
  0x2a   :  { %663 = vmatprep.subr.bf16.mxu1 %v795_v0  ;;  %652 = vmatprep.mubr.msk.f32.mxu1 %vm796_vm0, %v797_v1  ;;  %v48_v3 = vld [vmem:[#allocation5 + $0x20] sm:$0xff]  ;;  %v46_v4 = vld [vmem:[#allocation5 + $0x10] sm:$0xff]  ;;  %v49_v6 = vld [vmem:[#allocation5 + $0x28] sm:$0xff]  ;;  %vm73_vm1 = vcmask 261120   ;;  %v798_v62 = vmov 683565275  }
  0x2b   :  { %141 = vmatprep.mubr.f32.mxu0 %v797_v1  ;;  %v655_v5 = vpack.c.bf16 %v48_v3, %v45_v2  ;;  %v44_v7 = vld [vmem:[#allocation5] sm:$0xff]  ;;  %v47_v8 = vld [vmem:[#allocation5 + $0x18] sm:$0xff]  ;;  %v664_v9 = vpack.c.bf16 %v49_v6, %v46_v4  ;;  %v54_v12 = vld [vmem:[#allocation5 + $0x50] sm:$0xff]  ;;  %v59_v22 = vshrl.u32 %v58_v21, 7  ;;  %v800_v2 = vmov 2131351028  }
  0x2c   :  { %v657_v10 = vpack.c.bf16 %v47_v8, %v44_v7  ;;  %v51_v11 = vld [vmem:[#allocation5 + $0x38] sm:$0xff]  ;;  %v52_v13 = vld [vmem:[#allocation5 + $0x40] sm:$0xff]  ;;  %v50_v16 = vld [vmem:[#allocation5 + $0x30] sm:$0xff]  ;;  %v801_v4 = vmov 2102212464  }
  0x2d   :  { %656 = vmatprep.subr.bf16.mxu0 %v655_v5  ;;  %v659_v14 = vpack.c.bf16 %v54_v12, %v51_v11  ;;  %v55_v15 = vld [vmem:[#allocation5 + $0x58] sm:$0xff]  ;;  %v53_v17 = vld [vmem:[#allocation5 + $0x48] sm:$0xff]  ;;  %665 = vmatpush3.bf16.msra.mxu1 %v664_v9  ;;  %v68_v23 = vsub.s32 2, %v59_v22  ;;  %v60_v24 = vsub.s32 0, %v59_v22  ;;  %v64_v26 = vsub.s32 1, %v59_v22 }
  0x2e   :  { %658 = vmatpush1.bf16.msra.mxu0 %v657_v10  ;;  %v667_v18 = vpack.c.bf16 %v55_v15, %v52_v13  ;;  %v661_v19 = vpack.c.bf16 %v53_v17, %v50_v16  ;;  %666 = vmatprep.subr.bf16.mxu1 %v795_v0  ;;  %v43_v20 = vld [vmem:[#allocation2] sm:$0xff]  ;;  %v799_v0 = vmov 2475754826   ;;  %v802_v6 = vmov 920167782  }
  0x2f   :  { %660 = vmatprep.subr.bf16.mxu0 %v659_v14  ;;  %v56_v25 = vld [vmem:[%s1105_s2] sm:$0x7]  ;;  %v803_v15 = vmov 1326507024  }
  0x30   :  { %v69_v27 = vrot.slane %v56_v25, %v68_v23  ;;  %v61_v28 = vrot.slane %v56_v25, %v60_v24  ;;  %v65_v29 = vrot.slane %v56_v25, %v64_v26 }
  0x31   :  { %668 = vmatpush3.bf16.msra.mxu1 %v667_v18 }
  0x32   :  { %662 = vmatpush1.bf16.msra.mxu0 %v661_v19 }
  0x34   :  { %653 = vmatmul.mubr.msk.f32.vlgmr.msra.gmra.mrb[0].mxu1 %vm73_vm1, %v43_v20 }
  0x35   :  { %625 = vmatmul.mubr.msk.f32.vlgmr.msra.gmra.mrb[0].mxu0 %vm73_vm1, %v43_v20 }
 0x107   :  { %v214_v30 = vpop.f32.mrb[0].mxu1 }
 0x108   :  { %v143_v31 = vpop.f32.mrb[0].mxu0  ;;  %v855_v32 = vadd.f32 %v214_v30, %v69_v27  ;;  %v654_v35 = vpop.f32.mrb[1].mxu1 }
 0x109   :  { %v857_v33 = vadd.f32 %v143_v31, %v61_v28  ;;  %v145_v34 = vpop.f32.mrb[1].mxu0 }
 0x10a   :  { %v859_v36 = vadd.f32 %v145_v34, %v65_v29  ;;  %v481_v37 = vand.u32 2147483647, %v855_v32  ;;  %v484_v38 = vand.u32 2139095040, %v855_v32 }
 0x10b   :  { %v273_v39 = vand.u32 2147483647, %v857_v33  ;;  %v276_v40 = vand.u32 2139095040, %v857_v33 }
 0x10c   :  { %v485_v41 = vshrl.u32 %v484_v38, 23  ;;  %v488_v42 = vand.u32 8388607, %v481_v37  ;;  %v380_v45 = vand.u32 2139095040, %v859_v36 }
 0x10d   :  { %v277_v43 = vshrl.u32 %v276_v40, 23  ;;  %v280_v44 = vand.u32 8388607, %v273_v39 }
 0x10e   :  { %v635_v46 = vadd.s32 4294967169, %v485_v41  ;;  %v381_v48 = vshrl.u32 %v380_v45, 23  ;;  %v489_v50 = vor.u32 8388608, %v488_v42 }
 0x10f   :  { %v627_v47 = vadd.s32 4294967169, %v277_v43  ;;  %v281_v51 = vor.u32 8388608, %v280_v44 }
 0x110   :  { %v491_v49 = vadd.s32 1, %v635_v46  ;;  %v631_v54 = vadd.s32 4294967169, %v381_v48  ;;  %v870_v58 = vshll.u32 %v489_v50, 8 }
 0x111   :  { %v283_v52 = vadd.s32 1, %v627_v47  ;;  %v874_v60 = vshll.u32 %v281_v51, 8 }
 0x112   :  { %vm492_vm2 = vcmp.gt.s32.totalorder %v491_v49, 0  ;;  %v883_v9 = vadd.s32 1, %v631_v54 }
 0x113   :  { %v493_v53 = vsel %vm492_vm2, %v491_v49, 0  ;;  %vm284_vm3 = vcmp.gt.s32.totalorder %v283_v52, 0 }
 0x114   :  { %v495_v55 = vand.u32 31, %v493_v53  ;;  %v285_v56 = vsel %vm284_vm3, %v283_v52, 0  ;;  %v494_v57 = vshrl.u32 %v493_v53, 5  ;;  %vm388_vm8 = vcmp.gt.s32.totalorder %v883_v9, 0 }
 0x115   :  { %v872_v59 = vand.u32 31, %v285_v56  ;;  %v881_v8 = vshrl.u32 %v285_v56, 5 }
 0x116   :  { %v496_v61 = vsub.s32 32, %v495_v55  ;;  %v498_v63 = vshll.u32 %v798_v62, %v495_v55  ;;  %v501_v1 = vshll.u32 %v799_v0, %v495_v55  ;;  %v504_v3 = vshll.u32 %v800_v2, %v495_v55 }
 0x117   :  { %v507_v5 = vshll.u32 %v801_v4, %v495_v55  ;;  %v510_v7 = vshll.u32 %v802_v6, %v495_v55  ;;  %vm513_vm4 = vcmp.lt.s32.totalorder %v494_v57, 1  ;;  %vm514_vm5 = vcmp.lt.s32.totalorder %v494_v57, 2 }
 0x118   :  { %v497_v10 = vshrl.u32 %v798_v62, %v496_v61  ;;  %v499_v11 = vshrl.u32 %v799_v0, %v496_v61  ;;  %v502_v12 = vshrl.u32 %v800_v2, %v496_v61  ;;  %v505_v13 = vshrl.u32 %v801_v4, %v496_v61 }
 0x119   :  { %v508_v14 = vshrl.u32 %v802_v6, %v496_v61  ;;  %v511_v16 = vshrl.u32 %v803_v15, %v496_v61  ;;  %v288_v20 = vsub.s32 32, %v872_v59  ;;  %vm515_vm6 = vcmp.lt.s32.totalorder %v494_v57, 3 }
 0x11a   :  { %v500_v17 = vor.u32 %v499_v11, %v498_v63  ;;  %v503_v18 = vor.u32 %v502_v12, %v501_v1  ;;  %v506_v19 = vor.u32 %v505_v13, %v504_v3  ;;  %vm516_vm7 = vcmp.lt.s32.totalorder %v494_v57, 4 }
 0x11b   :  { %v509_v22 = vor.u32 %v508_v14, %v507_v5  ;;  %v512_v23 = vor.u32 %v511_v16, %v510_v7  ;;  %v290_v31 = vshll.u32 %v798_v62, %v872_v59  ;;  %v291_v38 = vshrl.u32 %v799_v0, %v288_v20 }
 0x11c   :  { %v517_v24 = vsel %vm513_vm4, %v497_v10, %v500_v17  ;;  %v518_v25 = vsel %vm516_vm7, %v506_v19, 2102212464  ;;  %v521_v26 = vsel %vm513_vm4, %v500_v17, %v503_v18  ;;  %v525_v27 = vsel %vm513_vm4, %v503_v18, %v506_v19 }
 0x11d   :  { %v519_v28 = vsel %vm515_vm6, %v503_v18, %v518_v25  ;;  %v522_v29 = vsel %vm516_vm7, %v509_v22, 920167782  ;;  %v526_v30 = vsel %vm516_vm7, %v512_v23, 1326507024  ;;  %v293_v40 = vshll.u32 %v799_v0, %v872_v59 }
 0x11e   :  { %v523_v34 = vsel %vm515_vm6, %v506_v19, %v522_v29  ;;  %v527_v35 = vsel %vm515_vm6, %v509_v22, %v526_v30  ;;  %v520_v41 = vsel %vm514_vm5, %v517_v24, %v519_v28  ;;  %v294_v44 = vshrl.u32 %v800_v2, %v288_v20 }
 0x11f   :  { %v524_v42 = vsel %vm514_vm5, %v521_v26, %v523_v34  ;;  %v528_v43 = vsel %vm514_vm5, %v525_v27, %v527_v35  ;;  %v292_v49 = vor.u32 %v291_v38, %v290_v31  ;;  %v296_v51 = vshll.u32 %v800_v2, %v872_v59 }
 0x120   :  { %v903_v45 = vmul.u32.u64.low %v870_v58, %v528_v43  ;;  %v904_v46 = vmul.u32.u64.high %v870_v58, %v528_v43, %v903_v45  ;;  %v907_v47 = vmul.u32.u64.low %v870_v58, %v524_v42  ;;  %v908_v48 = vmul.u32.u64.high %v870_v58, %v524_v42, %v907_v47 }
 0x121   :  { %v295_v50 = vor.u32 %v294_v44, %v293_v40  ;;  %v297_v52 = vshrl.u32 %v801_v4, %v288_v20  ;;  %v289_v53 = vshrl.u32 %v798_v62, %v288_v20  ;;  %v299_v54 = vshll.u32 %v801_v4, %v872_v59 }
 0x122   :  { %v300_v55 = vshrl.u32 %v802_v6, %v288_v20  ;;  %v303_v56 = vshrl.u32 %v803_v15, %v288_v20  ;;  %v536_v57 = vmul.u32 %v870_v58, %v520_v41  ;;  %v302_v63 = vshll.u32 %v802_v6, %v872_v59 }
 0x123   :  { %v298_v61 = vor.u32 %v297_v52, %v296_v51  ;;  %vm305_vm9 = vcmp.lt.s32.totalorder %v881_v8, 1  ;;  %vm538_vm10 = vc.u32 %v904_v46, %v907_v47  ;;  %v539_v1 = vadd.s32 1, %v908_v48 }
 0x124   :  { %v301_v3 = vor.u32 %v300_v55, %v299_v54  ;;  %vm306_vm11 = vcmp.lt.s32.totalorder %v881_v8, 2  ;;  %v304_v5 = vor.u32 %v303_v56, %v302_v63  ;;  %vm307_vm12 = vcmp.lt.s32.totalorder %v881_v8, 3 }
 0x125   :  { %vm308_vm13 = vcmp.lt.s32.totalorder %v881_v8, 4  ;;  %v313_v58 = vsel %vm305_vm9, %v292_v49, %v295_v50  ;;  %v540_v7 = vsel %vm538_vm10, %v539_v1, %v908_v48  ;;  %v317_v11 = vsel %vm305_vm9, %v295_v50, %v298_v61 }
 0x126   :  { %v310_v10 = vsel %vm308_vm13, %v298_v61, 2102212464  ;;  %v314_v59 = vsel %vm308_vm13, %v301_v3, 920167782  ;;  %v541_v12 = vadd.s32 %v540_v7, %v536_v57  ;;  %v309_v13 = vsel %vm305_vm9, %v289_v53, %v292_v49 }
 0x127   :  { %v315_v14 = vsel %vm307_vm12, %v298_v61, %v314_v59  ;;  %v318_v16 = vsel %vm308_vm13, %v304_v5, 1326507024  ;;  %v311_v17 = vsel %vm307_vm12, %v295_v50, %v310_v10  ;;  %v389_v20 = vsel %vm388_vm8, %v883_v9, 0 }
 0x128   :  { %v316_v18 = vsel %vm306_vm11, %v313_v58, %v315_v14  ;;  %v319_v19 = vsel %vm307_vm12, %v301_v3, %v318_v16  ;;  %v542_v22 = vadd.s32 536870912, %v541_v12  ;;  %v377_v28 = vand.u32 2147483647, %v859_v36 }
 0x129   :  { %v320_v23 = vsel %vm306_vm11, %v317_v11, %v319_v19  ;;  %v938_v24 = vmul.u32.u64.low %v874_v60, %v316_v18  ;;  %v939_v25 = vmul.u32.u64.high %v874_v60, %v316_v18, %v938_v24  ;;  %v312_v9 = vsel %vm306_vm11, %v309_v13, %v311_v17 }
 0x12a   :  { %v943_v26 = vmul.u32.u64.low %v874_v60, %v320_v23  ;;  %v944_v27 = vmul.u32.u64.high %v874_v60, %v320_v23, %v943_v26  ;;  %v947_v29 = vshrl.u32 %v542_v22, 30  ;;  %v391_v30 = vand.u32 31, %v389_v20 }
 0x12b   :  { %v952_v31 = vand.u32 127, %v58_v21  ;;  %v331_v35 = vadd.s32 1, %v939_v25  ;;  %v328_v40 = vmul.u32 %v874_v60, %v312_v9  ;;  %v384_v41 = vand.u32 8388607, %v377_v28 }
 0x12c   :  { %v544_v34 = vshll.u32 %v947_v29, 30  ;;  %v392_v38 = vsub.s32 32, %v391_v30  ;;  %vm330_vm14 = vc.u32 %v944_v27, %v938_v24  ;;  %v390_v51 = vshrl.u32 %v389_v20, 5 }
 0x12d   :  { %v332_v8 = vsel %vm330_vm14, %v331_v35, %v939_v25  ;;  %v964_v44 = vadd.s32 256, %v952_v31  ;;  %v385_v50 = vor.u32 8388608, %v384_v41  ;;  %v394_v52 = vshll.u32 %v798_v62, %v391_v30 }
 0x12e   :  { %v545_v42 = vsub.s32 %v541_v12, %v544_v34  ;;  %v333_v43 = vadd.s32 %v332_v8, %v328_v40  ;;  %v395_v21 = vshrl.u32 %v799_v0, %v392_v38  ;;  %v398_v48 = vshrl.u32 %v800_v2, %v392_v38 }
 0x12f   :  { %v401_v60 = vshrl.u32 %v801_v4, %v392_v38  ;;  %v397_v54 = vshll.u32 %v799_v0, %v391_v30  ;;  %v400_v55 = vshll.u32 %v800_v2, %v391_v30  ;;  %v404_v56 = vshrl.u32 %v802_v6, %v392_v38 }
 0x130   :  { %v547_v45 = vsub.s32 0, %v545_v42  ;;  %v334_v49 = vadd.s32 536870912, %v333_v43  ;;  %v396_v61 = vor.u32 %v395_v21, %v394_v52  ;;  %v403_v63 = vshll.u32 %v801_v4, %v391_v30 }
 0x131   :  { %v407_v1 = vshrl.u32 %v803_v15, %v392_v38  ;;  %v399_v5 = vor.u32 %v398_v48, %v397_v54  ;;  %v402_v58 = vor.u32 %v401_v60, %v400_v55  ;;  %v406_v7 = vshll.u32 %v802_v6, %v391_v30 }
 0x132   :  { %v636_v53 = vmin.u32 %v547_v45, %v545_v42  ;;  %v972_v57 = vshrl.u32 %v334_v49, 30  ;;  %v978_v10 = vmul.u32.u64.low 2863311531, %v964_v44  ;;  %v979_v59 = vmul.u32.u64.high 2863311531, %v964_v44, %v978_v10 }
 0x133   :  { %v405_v2 = vor.u32 %v404_v56, %v403_v63  ;;  %v408_v12 = vor.u32 %v407_v1, %v406_v7  ;;  %vm412_vm15 = vcmp.lt.s32.totalorder %v390_v51, 4  ;;  %v425_v13 = vshll.u32 %v385_v50, 8 }
 0x134   :  { %v549_v3 = vclz %v636_v53  ;;  %v336_v0 = vshll.u32 %v972_v57, 30  ;;  %vm409_vm0 = vcmp.lt.s32.totalorder %v390_v51, 1  ;;  %vm411_vm1 = vcmp.lt.s32.totalorder %v390_v51, 3 }
 0x135   :  { %v418_v4 = vsel %vm412_vm15, %v405_v2, 920167782  ;;  %v537_v6 = vadd.s32 %v907_v47, %v904_v46  ;;  %v417_v15 = vsel %vm409_vm0, %v396_v61, %v399_v5  ;;  %vm410_vm3 = vcmp.lt.s32.totalorder %v390_v51, 2 }
 0x136   :  { %v637_v11 = vadd.s32 4294967294, %v549_v3  ;;  %v982_v14 = vsub.s32 %v333_v43, %v336_v0  ;;  %v419_v16 = vsel %vm411_vm1, %v402_v58, %v418_v4  ;;  %v421_v19 = vsel %vm409_vm0, %v399_v5, %v402_v58 }
 0x137   :  { %v414_v23 = vsel %vm412_vm15, %v402_v58, 2102212464  ;;  %v422_v25 = vsel %vm412_vm15, %v408_v12, 1326507024  ;;  %v393_v46 = vshrl.u32 %v798_v62, %v392_v38  ;;  %v420_v47 = vsel %vm410_vm3, %v417_v15, %v419_v16 }
 0x138   :  { %vm638_vm2 = vcmp.lt.s32.totalorder %v637_v11, 0  ;;  %v339_v18 = vsub.s32 0, %v982_v14  ;;  %v423_v9 = vsel %vm411_vm1, %v405_v2, %v422_v25  ;;  %v415_v43 = vsel %vm411_vm1, %v399_v5, %v414_v23 }
 0x139   :  { %v552_v17 = vsel %vm638_vm2, 0, %v637_v11  ;;  %v424_v40 = vsel %vm410_vm3, %v421_v19, %v423_v9  ;;  %v413_v8 = vsel %vm409_vm0, %v393_v46, %v396_v61  ;;  %v250_v50 = vshrl.u32 %v979_v59, 6 }
 0x13a   :  { %v553_v20 = vsub.s32 32, %v552_v17  ;;  %v557_v22 = vsub.s32 4294967266, %v552_v17  ;;  %v628_v26 = vmin.u32 %v339_v18, %v982_v14  ;;  %v554_v30 = vshll.u32 %v545_v42, %v552_v17 }
 0x13b   :  { %v1000_v48 = vmul.u32.u64.low %v425_v13, %v424_v40  ;;  %v1001_v60 = vmul.u32.u64.high %v425_v13, %v424_v40, %v1000_v48  ;;  %v1003_v38 = vmul.u32.u64.low %v425_v13, %v420_v47  ;;  %v1004_v49 = vmul.u32.u64.high %v425_v13, %v420_v47, %v1003_v38 }
 0x13c   :  { %v555_v34 = vshrl.u32 %v537_v6, %v553_v20  ;;  %v558_v35 = vadd.s32 127, %v557_v22  ;;  %v341_v41 = vclz %v628_v26  ;;  %v416_v52 = vsel %vm410_vm3, %v413_v8, %v415_v43 }
 0x13d   :  { %vm434_vm5 = vc.u32 %v1001_v60, %v1003_v38  ;;  %v435_v63 = vadd.s32 1, %v1004_v49  ;;  %v567_v3 = vsub.s32 4, %v947_v29  ;;  %v329_v5 = vadd.s32 %v938_v24, %v944_v27 }
 0x13e   :  { %v556_v21 = vor.u32 %v555_v34, %v554_v30  ;;  %v559_v45 = vshll.u32 %v558_v35, 23  ;;  %v629_v62 = vadd.s32 4294967294, %v341_v41  ;;  %v432_v58 = vmul.u32 %v425_v13, %v416_v52 }
 0x13f   :  { %v251_v7 = vmul.u32 96, %v250_v50  ;;  %v436_v10 = vsel %vm434_vm5, %v435_v63, %v1004_v49  ;;  %vm1018_vm6 = vcmp.le.f32.partialorder %v481_v37, 0.7853982  ;;  %vm483_vm7 = vcmp.lt.s32.totalorder %v855_v32, 0 }
 0x140   :  { %v560_v42 = vor.u32 4788187, %v559_v45  ;;  %vm630_vm4 = vcmp.lt.s32.totalorder %v629_v62, 0  ;;  %v563_v54 = vcvt.s32.f32 %v556_v21  ;;  %v437_v2 = vadd.s32 %v436_v10, %v432_v58 }
 0x141   :  { %v344_v55 = vsel %vm630_vm4, 0, %v629_v62  ;;  %v568_v24 = vsel %vm483_vm7, %v567_v3, %v947_v29  ;;  %v252_v6 = vsub.s32 %v964_v44, %v251_v7  ;;  %v220_v43 = vadd.s32 128, %v952_v31 }
 0x142   :  { %v561_v53 = vand.u32 2147483647, %v560_v42  ;;  %v345_v56 = vsub.s32 32, %v344_v55  ;;  %v349_v61 = vsub.s32 4294967266, %v344_v55  ;;  %v346_v27 = vshll.u32 %v982_v14, %v344_v55 }
 0x143   :  { %v438_v13 = vadd.s32 536870912, %v437_v2  ;;  %v570_v18 = vsel %vm1018_vm6, 0, %v568_v24  ;;  %vm257_vm8 = vcmp.ne.s32.totalorder %v252_v6, 0  ;;  %vm260_vm9 = vcmp.lt.s32.totalorder %v252_v6, 0 }
 0x144   :  { %v564_v1 = vmul.f32 %v563_v54, %v561_v53  ;;  %v350_v51 = vadd.s32 127, %v349_v61  ;;  %v347_v0 = vshrl.u32 %v329_v5, %v345_v56  ;;  %v574_v14 = vadd.s32 3, %v570_v18  ;;  %vm263_vm10 = vmand %vm260_vm9, %vm257_vm8 }
 0x145   :  { %v1029_v17 = vshrl.u32 %v438_v13, 30  ;;  %v266_v22 = vadd.s32 96, %v252_v6  ;;  %v1035_v40 = vmul.u32.u64.low 2863311531, %v952_v31  ;;  %v1036_v41 = vmul.u32.u64.high 2863311531, %v952_v31, %v1035_v40 }
 0x146   :  { %v565_v59 = vxor.u32 2147483648, %v564_v1  ;;  %v351_v12 = vshll.u32 %v350_v51, 23  ;;  %v348_v37 = vor.u32 %v347_v0, %v346_v27  ;;  %v575_v26 = vand.u32 3, %v574_v14 }
 0x147   :  { %v440_v29 = vshll.u32 %v1029_v17, 30  ;;  %v269_v9 = vsel %vm263_vm10, %v266_v22, %v252_v6  ;;  %vm275_vm14 = vcmp.lt.s32.totalorder %v857_v33, 0  ;;  %vm573_vm1 = vweird.f32 %v855_v32 }
 0x148   :  { %v566_v4 = vsel %vm483_vm7, %v565_v59, %v564_v1  ;;  %v352_v16 = vor.u32 4788187, %v351_v12  ;;  %v355_v44 = vcvt.s32.f32 %v348_v37  ;;  %vm580_vm11 = vcmp.eq.s32.totalorder %v575_v26, 2 }
 0x149   :  { %v569_v15 = vsel %vm1018_vm6, %v855_v32, %v566_v4  ;;  %v441_v20 = vsub.s32 %v437_v2, %v440_v29  ;;  %vm1039_vm12 = vcmp.lt.s32.totalorder %v269_v9, 64  ;;  %vm577_vm13 = vcmp.eq.s32.totalorder %v575_v26, 0 }
 0x14a   :  { %705 = vcosq.f32 %v569_v15  ;;  %v353_v19 = vand.u32 2147483647, %v352_v16  ;;  %vm576_vm15 = vcmp.lt.s32.totalorder %v575_v26, 2  ;;  %vm1049_vm2 = vcmp.le.f32.partialorder %v273_v39, 0.7853982 }
 0x14b   :  { %707 = vsinq.f32 %v569_v15  ;;  %v443_v25 = vsub.s32 0, %v441_v20  ;;  %v433_v55 = vadd.s32 %v1003_v38, %v1001_v60  ;;  %v359_v60 = vsub.s32 4, %v972_v57 }
 0x14c   :  { %v356_v23 = vmul.f32 %v355_v44, %v353_v19  ;;  %v1055_v63 = vmul.u32.u64.low 2863311531, %v220_v43  ;;  %v1056_v1 = vmul.u32.u64.high 2863311531, %v220_v43, %v1055_v63  ;;  %v228_v0 = vshrl.u32 %v1036_v41, 6 }
 0x14d   :  { %v632_v46 = vmin.u32 %v443_v25, %v441_v20  ;;  %v463_v27 = vsub.s32 4, %v1029_v17  ;;  %vm379_vm3 = vcmp.lt.s32.totalorder %v859_v36, 0  ;;  %vm1076_vm4 = vcmp.le.f32.partialorder %v377_v28, 0.7853982 }
 0x14e   :  { %v357_v30 = vxor.u32 2147483648, %v356_v23  ;;  %v239_v12 = vshrl.u32 %v1056_v1, 6  ;;  %v229_v13 = vmul.u32 96, %v228_v0 }
 0x14f   :  { %v445_v34 = vclz %v632_v46  ;;  %v464_v19 = vsel %vm379_vm3, %v463_v27, %v1029_v17 }
 0x150   :  { %v358_v42 = vsel %vm275_vm14, %v357_v30, %v356_v23  ;;  %v240_v16 = vmul.u32 96, %v239_v12  ;;  %v230_v14 = vsub.s32 %v952_v31, %v229_v13  ;;  %v466_v23 = vsel %vm1076_vm4, 0, %v464_v19 }
 0x151   :  { %v633_v45 = vadd.s32 4294967294, %v445_v34  ;;  %v361_v39 = vsel %vm1049_vm2, %v857_v33, %v358_v42  ;;  %v470_v17 = vadd.s32 3, %v466_v23 }
 0x152   :  { %709 = vcosq.f32 %v361_v39  ;;  %v241_v22 = vsub.s32 %v220_v43, %v240_v16  ;;  %vm255_vm5 = vcmp.ne.s32.totalorder %v230_v14, 0  ;;  %vm258_vm6 = vcmp.lt.s32.totalorder %v230_v14, 0 }
 0x153   :  { %vm634_vm0 = vcmp.lt.s32.totalorder %v633_v45, 0  ;;  %711 = vsinq.f32 %v361_v39  ;;  %v264_v26 = vadd.s32 96, %v230_v14  ;;  %v471_v9 = vand.u32 3, %v470_v17 }
 0x154   :  { %v706_v47 = vpop.eup %705  ;;  %v448_v53 = vsel %vm634_vm0, 0, %v633_v45  ;;  %vm256_vm9 = vcmp.ne.s32.totalorder %v241_v22, 0  ;;  %vm259_vm10 = vcmp.lt.s32.totalorder %v241_v22, 0 }
 0x155   :  { %v708_v35 = vpop.eup %707  ;;  %v581_v8 = vxor.u32 2147483648, %v706_v47  ;;  %v449_v56 = vsub.s32 32, %v448_v53  ;;  %v453_v61 = vsub.s32 4294967266, %v448_v53  ;;  %v450_v58 = vshll.u32 %v441_v20, %v448_v53 }
 0x156   :  { %v578_v21 = vxor.u32 2147483648, %v708_v35  ;;  %vm476_vm0 = vcmp.eq.s32.totalorder %v471_v9, 2 }
 0x157   :  { %v582_v62 = vsel %vm580_vm11, %v581_v8, %v708_v35  ;;  %v451_v7 = vshrl.u32 %v433_v55, %v449_v56  ;;  %v454_v51 = vadd.s32 127, %v453_v61  ;;  %vm261_vm11 = vmand %vm258_vm6, %vm255_vm5 }
 0x158   :  { %v579_v49 = vsel %vm577_vm13, %v706_v47, %v578_v21  ;;  %v265_v47 = vadd.s32 96, %v241_v22  ;;  %vm262_vm13 = vmand %vm259_vm10, %vm256_vm9  ;;  %v267_v30 = vsel %vm261_vm11, %v264_v26, %v230_v14 }
 0x159   :  { %v583_v50 = vsel %vm576_vm15, %v579_v49, %v582_v62  ;;  %v452_v38 = vor.u32 %v451_v7, %v450_v58  ;;  %v455_v10 = vshll.u32 %v454_v51, 23  ;;  %vm270_vm15 = vcmp.lt.s32.totalorder %v267_v30, 64 }
 0x15a   :  { %v584_v54 = vsel %vm573_vm1, nan, %v583_v50  ;;  %v268_v41 = vsel %vm262_vm13, %v265_v47, %v241_v22  ;;  %vm473_vm1 = vcmp.eq.s32.totalorder %v471_v9, 0 }
 0x15b   :  { %v593_v3 = vsel %vm1039_vm12, %v584_v54, %v855_v32  ;;  %v456_v59 = vor.u32 4788187, %v455_v10  ;;  %v360_v32 = vsel %vm275_vm14, %v359_v60, %v972_v57  ;;  %v459_v11 = vcvt.s32.f32 %v452_v38 }
 0x15c   :  { %v599_v5 = vcombine.high %v593_v3, %v593_v3  ;;  %604 = vst [vmem:[#allocation7 + $0x8] sm:$0xf] %v593_v3  ;;  %v362_v4 = vsel %vm1049_vm2, 0, %v360_v32  ;;  %v710_v37 = vpop.eup %709  ;;  %vm365_vm14 = vweird.f32 %v857_v33  ;;  %vm271_vm2 = vcmp.lt.s32.totalorder %v268_v41, 64 }
 0x15d   :  { %v457_v2 = vand.u32 2147483647, %v456_v59  ;;  %v366_v15 = vadd.s32 3, %v362_v4  ;;  %v712_v29 = vpop.eup %711  ;;  %v373_v25 = vxor.u32 2147483648, %v710_v37 }
 0x15e   :  { %606 = vst [vmem:[#allocation7 + $0x14] sm:$0xf] %v599_v5  ;;  %v370_v28 = vxor.u32 2147483648, %v712_v29 }
 0x15f   :  { %v460_v24 = vmul.f32 %v459_v11, %v457_v2  ;;  %v367_v20 = vand.u32 3, %v366_v15 }
 0x161   :  { %v461_v6 = vxor.u32 2147483648, %v460_v24  ;;  %vm369_vm7 = vcmp.eq.s32.totalorder %v367_v20, 0  ;;  %vm372_vm8 = vcmp.eq.s32.totalorder %v367_v20, 2  ;;  %vm368_vm12 = vcmp.lt.s32.totalorder %v367_v20, 2 }
 0x162   :  { %v371_v31 = vsel %vm369_vm7, %v710_v37, %v370_v28  ;;  %v374_v46 = vsel %vm372_vm8, %v373_v25, %v712_v29 }
 0x163   :  { %v462_v18 = vsel %vm379_vm3, %v461_v6, %v460_v24  ;;  %v375_v34 = vsel %vm368_vm12, %v371_v31, %v374_v46  ;;  %vm472_vm3 = vcmp.lt.s32.totalorder %v471_v9, 2 }
 0x164   :  { %v465_v44 = vsel %vm1076_vm4, %v859_v36, %v462_v18  ;;  %v376_v43 = vsel %vm365_vm14, nan, %v375_v34  ;;  %vm469_vm4 = vweird.f32 %v859_v36 }
 0x165   :  { %713 = vcosq.f32 %v465_v44  ;;  %v591_v62 = vsel %vm270_vm15, %v376_v43, %v857_v33 }
 0x166   :  { %715 = vsinq.f32 %v465_v44 }
 0x16f   :  { %v714_v35 = vpop.eup %713 }
 0x170   :  { %v716_v40 = vpop.eup %715  ;;  %v477_v8 = vxor.u32 2147483648, %v714_v35 }
 0x171   :  { %v474_v21 = vxor.u32 2147483648, %v716_v40 }
 0x172   :  { %v478_v45 = vsel %vm476_vm0, %v477_v8, %v716_v40 }
 0x173   :  { %v475_v48 = vsel %vm473_vm1, %v714_v35, %v474_v21 }
 0x174   :  { %v479_v49 = vsel %vm472_vm3, %v475_v48, %v478_v45 }
 0x175   :  { %v480_v42 = vsel %vm469_vm4, nan, %v479_v49 }
 0x176   :  { %v592_v50 = vsel %vm271_vm2, %v480_v42, %v859_v36 }
 0x177   :  { %v597_v52 = vcombine.low %v591_v62, %v592_v50  ;;  %v598_v53 = vcombine.high %v591_v62, %v592_v50 }
 0x179   :  { %603 = vst [vmem:[#allocation7] sm:$0xff] %v597_v52  ;;  %605 = vst [vmem:[#allocation7 + $0xc] sm:$0xff] %v598_v53 }
 0x17a   :  { %611 = vsyncadd [#allocation4], 192  ;;  %s804_s2 = smov [#allocation7]  }
 0x17b   :  { %s612_s14 = sshll.u32 %s804_s2, 4  ;;  %s613_s14 = int_to_ptr.vmem [resolvable:$true] %s612_s14 }
 0x17c   :  { %s761_s15 = scalar_lea.vmem %s613_s14, 192  ;;  %s765_s16 = scalar_lea.vmem %s613_s14, 384 }
 0x17d   :  { %p762_p2 = scmp.ne.s32.totalorder %s613_s14, %s761_s15  ;;  %p766_p3 = scmp.lt.s32.totalorder %s613_s14, %s613_s14 }
 0x17e   :  { %p767_p4 = scmp.lt.s32.totalorder %s765_s16, %s761_s15 }
 0x180   :  { %p768_p5 = por %p767_p4, %p766_p3 }
 0x182   :  { %p769_p6 = pnand %p768_p5, %p762_p2 }
 0x184   :  { %772 = shalt.err (!%p769_p6)
}
 0x185   :  { %s773_s19 = scalar_lea.hbm %s1106_s3, 192 }
 0x186   :  { %p774_p7 = scmp.ne.s32.totalorder %s1106_s3, %s773_s19  ;;  %p777_p8 = scmp.lt.u32.totalorder %s773_s19, %s1106_s3 }
 0x188   :  { %p779_p9 = pnand %p777_p8, %p774_p7 }
 0x18a   :  { %782 = shalt.err (!%p779_p9)
}
 0x18b   :  { %s805_s24 = smov 192   ;;  %s806_s25 = smov 12  }
 0x18c   :  { %618 = dma.vmem_to_hbm [thread:$0]  %s613_s14, 192, %s1106_s3, [#allocation4], %s805_s24, %s805_s24, %s806_s25  }
 0x18d   :  { %787 = dma.done.wait [#allocation4], 384  }
 0x18e   :  { %788 = vsyncadd [#allocation4], 4294966912 }
 0x18f   :  { %622 = vsyncpa [#allocation3], 1 }
 0x190   :  { %623 = vsyncpa [#allocation6], 1 }
 0x191   :  { %624 = vsyncpa [#allocation4], 1 }

</bundles_post_ra>
